<compile_context>
chip_gen: v5e
topology: v5e:2x2
jax: 0.10.0
libtpu: 0.0.40
codegen_flags: <defaults>
</compile_context>

<pallas_src>
import functools

import jax
import jax.numpy as jnp
from jax import lax
from jax.experimental import pallas as pl
from jax.experimental.pallas import tpu as pltpu


# --------------------------------------------------------------------------
# Kernels
# --------------------------------------------------------------------------
def _se_kernel(x_ref, w1_ref, w2_ref, o_ref, *, inv_hw):
    """Single-pass SE: pool + fc1/relu + fc2/sigmoid + scale, one batch block."""
    x = x_ref[...]                                            # (BB, C, HW)

    # squeeze: global average pool over spatial (f32 accumulation).
    y = jnp.sum(x, axis=-1, dtype=jnp.float32) * inv_hw       # (BB, C)

    # excitation: Linear(C->Cr) + ReLU, Linear(Cr->C) + Sigmoid, contracting
    # directly against PyTorch (out_features, in_features) weight layouts.
    h = lax.dot_general(y, w1_ref[...], (((1,), (1,)), ((), ())),
                        preferred_element_type=jnp.float32)   # (BB, Cr)
    h = jnp.maximum(h, 0.0)
    s = lax.dot_general(h, w2_ref[...], (((1,), (1,)), ((), ())),
                        preferred_element_type=jnp.float32)   # (BB, C)
    s = jax.nn.sigmoid(s)

    # scale: broadcast channel gates over spatial in the native dtype.
    o_ref[...] = (x * s.astype(x.dtype)[:, :, None]).astype(o_ref.dtype)


def _pool_fc_kernel(x_ref, w1_ref, w2_ref, g_ref, acc_ref, *,
                    inv_hw, hw, hw_chunk, mask_tail):
    """Two-pass fallback, pass 1: spatial-chunked pooling + FC -> gates."""
    s = pl.program_id(1)

    @pl.when(s == 0)
    def _():
        acc_ref[...] = jnp.zeros_like(acc_ref)

    x = x_ref[...]                                            # (1, C, HWc)
    if mask_tail:
        # The last spatial chunk may read past HW; zero those lanes so the
        # pooled sum stays correct.
        idx = lax.broadcasted_iota(jnp.int32, x.shape, 2) + s * hw_chunk
        x = jnp.where(idx < hw, x, jnp.zeros_like(x))
    acc_ref[...] += jnp.sum(x, axis=-1, dtype=jnp.float32)    # (1, C)

    @pl.when(s == pl.num_programs(1) - 1)
    def _():
        y = acc_ref[...] * inv_hw                             # (1, C)
        h = lax.dot_general(y, w1_ref[...], (((1,), (1,)), ((), ())),
                            preferred_element_type=jnp.float32)
        h = jnp.maximum(h, 0.0)
        g = lax.dot_general(h, w2_ref[...], (((1,), (1,)), ((), ())),
                            preferred_element_type=jnp.float32)
        g_ref[...] = jax.nn.sigmoid(g)[:, None, :]            # (1, 1, C)


def _scale_kernel(x_ref, g_ref, o_ref):
    """Two-pass fallback, pass 2: x * gates, streamed over spatial chunks."""
    x = x_ref[...]                                            # (1, C, HWc)
    g = g_ref[0]                                              # (1, C) f32
    o_ref[...] = (x * g.astype(x.dtype)[:, :, None]).astype(o_ref.dtype)


# --------------------------------------------------------------------------
# Sizing helpers
# --------------------------------------------------------------------------
def _vmem_capacity_bytes():
    """Physical VMEM of the local chip; conservative 64 MiB (v7x) fallback."""
    try:
        info = pltpu.get_tpu_info()
        for name in ("vmem_capacity_bytes", "vmem_size_bytes", "vmem_bytes"):
            v = getattr(info, name, None)
            if v:
                return int(v)
    except Exception:
        pass
    return 64 << 20


def _pick_block_batch(B, per_item_bytes, target_bytes, min_steps=8):
    """Largest batch-block fitting the budget, trimmed (never below ~1 MiB
    blocks) so the grid keeps >= min_steps steps for pipeline overlap and for
    sharding the 'parallel' axis across both v7x TensorCores."""
    bb_budget = max(1, min(B, target_bytes // per_item_bytes))
    bb_steps = max(1, B // min(min_steps, B))
    min_block_items = max(1, min(B, -(-(1 << 20) // per_item_bytes)))  # ceil
    return min(bb_budget, max(bb_steps, min_block_items))


# --------------------------------------------------------------------------
# Wrapper
# --------------------------------------------------------------------------
def se_layer(x, w_fc1, w_fc2, *, block_batch=None, block_target_bytes=None,
             force_two_pass=False, spatial_chunk=None):
    """SE layer forward.  x: (B, C, H, W); w_fc1: (Cr, C), w_fc2: (C, Cr)
    (PyTorch nn.Linear (out_features, in_features) convention, no bias).
    Keyword args are tuning/testing knobs; defaults are generation-aware."""
    B, C, H, W = x.shape
    Cr = w_fc1.shape[0]
    HW = H * W
    x_flat = x.reshape(B, C, HW)

    itemsize = jnp.dtype(x.dtype).itemsize
    w_bytes = (w_fc1.size + w_fc2.size) * jnp.dtype(w_fc1.dtype).itemsize

    # Generation-aware VMEM budget: ~72% of physical, capped at 100 MiB
    # (v5e/v6e 128 MiB -> ~92 MiB, v7x 64 MiB -> ~46 MiB).
    vmem_cap = _vmem_capacity_bytes()
    vmem_limit = min(max(int(vmem_cap * 0.72), 24 << 20), 100 << 20)

    if block_target_bytes is None:
        # 2x double-buffered input + 2x double-buffered output + weights must
        # fit; cap blocks at 8 MiB (mem-bound throughput plateaus well before).
        block_target_bytes = min(
            8 << 20, max(1 << 20, (vmem_limit - 4 * w_bytes - (2 << 20)) // 4))

    per_item_bytes = C * HW * itemsize
    two_pass = force_two_pass or per_item_bytes > block_target_bytes

    if not two_pass:
        # ---------------- single-pass path ----------------
        BB = (block_batch if block_batch is not None
              else _pick_block_batch(B, per_item_bytes, block_target_bytes))
        grid = (pl.cdiv(B, BB),)   # ragged last block handled by Pallas masking

        out_flat = pl.pallas_call(
            functools.partial(_se_kernel, inv_hw=1.0 / HW),
            out_shape=jax.ShapeDtypeStruct((B, C, HW), x.dtype),
            grid_spec=pltpu.PrefetchScalarGridSpec(
                num_scalar_prefetch=0,
                grid=grid,
                in_specs=[
                    pl.BlockSpec((BB, C, HW), lambda b: (b, 0, 0)),
                    pl.BlockSpec((Cr, C), lambda b: (0, 0)),
                    pl.BlockSpec((C, Cr), lambda b: (0, 0)),
                ],
                out_specs=pl.BlockSpec((BB, C, HW), lambda b: (b, 0, 0)),
            ),
            compiler_params=pltpu.CompilerParams(
                dimension_semantics=("parallel",),
                vmem_limit_bytes=vmem_limit,
            ),
        )(x_flat, w_fc1, w_fc2)
        return out_flat.reshape(B, C, H, W)

    # ---------------- two-pass fallback (single item too big) ----------------
    if spatial_chunk is None:
        hw_chunk = max(128, (block_target_bytes // (C * itemsize)) // 128 * 128)
    else:
        hw_chunk = spatial_chunk            # test knob; must be a 128 multiple
    hw_chunk = min(hw_chunk, HW)
    n_s = pl.cdiv(HW, hw_chunk)
    mask_tail = (HW % hw_chunk) != 0

    # Pass 1: pooled sums over spatial chunks -> per-(B, C) sigmoid gates.
    gates = pl.pallas_call(
        functools.partial(_pool_fc_kernel, inv_hw=1.0 / HW, hw=HW,
                          hw_chunk=hw_chunk, mask_tail=mask_tail),
        out_shape=jax.ShapeDtypeStruct((B, 1, C), jnp.float32),
        grid_spec=pltpu.PrefetchScalarGridSpec(
            num_scalar_prefetch=0,
            grid=(B, n_s),
            in_specs=[
                pl.BlockSpec((1, C, hw_chunk), lambda b, s: (b, 0, s)),
                pl.BlockSpec((Cr, C), lambda b, s: (0, 0)),
                pl.BlockSpec((C, Cr), lambda b, s: (0, 0)),
            ],
            out_specs=pl.BlockSpec((1, 1, C), lambda b, s: (b, 0, 0)),
            scratch_shapes=[pltpu.VMEM((1, C), jnp.float32)],
        ),
        compiler_params=pltpu.CompilerParams(
            dimension_semantics=("parallel", "arbitrary"),
            vmem_limit_bytes=vmem_limit,
        ),
    )(x_flat, w_fc1, w_fc2)

    # Pass 2: stream x again and scale by the resident gates.
    out_flat = pl.pallas_call(
        _scale_kernel,
        out_shape=jax.ShapeDtypeStruct((B, C, HW), x.dtype),
        grid_spec=pltpu.PrefetchScalarGridSpec(
            num_scalar_prefetch=0,
            grid=(B, n_s),
            in_specs=[
                pl.BlockSpec((1, C, hw_chunk), lambda b, s: (b, 0, s)),
                pl.BlockSpec((1, 1, C), lambda b, s: (b, 0, 0)),
            ],
            out_specs=pl.BlockSpec((1, C, hw_chunk), lambda b, s: (b, 0, s)),
        ),
        compiler_params=pltpu.CompilerParams(
            dimension_semantics=("parallel", "arbitrary"),
            vmem_limit_bytes=vmem_limit,
        ),
    )(x_flat, gates)
    return out_flat.reshape(B, C, H, W)


# --------------------------------------------------------------------------
# Pure-JAX reference mirroring the PyTorch module
# --------------------------------------------------------------------------
def se_layer_ref(x, w_fc1, w_fc2):
    y = jnp.mean(x, axis=(2, 3))                 # AdaptiveAvgPool2d(1) + view
    y = jnp.maximum(y @ w_fc1.T, 0.0)            # Linear + ReLU
    y = jax.nn.sigmoid(y @ w_fc2.T)              # Linear + Sigmoid
    return x * y[:, :, None, None]


if __name__ == "__main__":
    key = jax.random.PRNGKey(0)
    kx, k1, k2 = jax.random.split(key, 3)

    B, C = 2, 32
    reduction = 16
    Cr = C // reduction

    # PyTorch nn.Linear weight shapes (out_features, in_features), no bias.
    w_fc1 = jax.random.normal(k1, (Cr, C), dtype=jnp.float32) * 0.1
    w_fc2 = jax.random.normal(k2, (C, Cr), dtype=jnp.float32) * 0.1

    def check(xs, **kw):
        out = jax.block_until_ready(se_layer(xs, w_fc1, w_fc2, **kw))
        ref = se_layer_ref(xs, w_fc1, w_fc2)
        assert out.shape == xs.shape
        assert jnp.allclose(out, ref, atol=1e-5, rtol=1e-5), f"mismatch {kw}"

    # 1) main case: HW multiple of 128, single-pass path.
    check(jax.random.normal(kx, (B, C, 16, 16), dtype=jnp.float32))

    # 2) ragged spatial (HW=225): no wrapper pad, masked tail store in-kernel.
    check(jax.random.normal(kx, (B, C, 15, 15), dtype=jnp.float32))

    # 3) ragged batch grid: B=3 with forced BB=2 -> cdiv grid, partial last block.
    check(jax.random.normal(kx, (3, C, 8, 8), dtype=jnp.float32), block_batch=2)

    # 4) two-pass fallback (spatial-chunked pool + scale), forced at small shape.
    check(jax.random.normal(kx, (B, C, 16, 17), dtype=jnp.float32),
          force_two_pass=True, spatial_chunk=128)

    print("KERNEL_OK")
</pallas_src>

<mosaic_0001>
module attributes {stable_mosaic.version = 11 : i64} {
  func.func @_se_kernel(%arg0: i32, %arg1: memref<2x32x256xf32, #tpu.memory_space<vmem>>, %arg2: memref<2x32xf32, #tpu.memory_space<vmem>>, %arg3: memref<32x2xf32, #tpu.memory_space<vmem>>, %arg4: memref<2x32x256xf32, #tpu.memory_space<vmem>>) attributes {dimension_semantics = [#tpu.dimension_semantics<parallel>], iteration_bounds = array<i64: 1>, scalar_prefetch = 0 : i64, scratch_operands = 0 : i64, tpu.core_type = #tpu.core_type<tc>, window_params = [{transform_indices = @transform_0, window_bounds = array<i64: 2, 32, 256>}, {pipeline_mode = #tpu.pipeline_mode<synchronous>, transform_indices = @transform_1, window_bounds = array<i64: 2, 32>}, {pipeline_mode = #tpu.pipeline_mode<synchronous>, transform_indices = @transform_2, window_bounds = array<i64: 32, 2>}, {transform_indices = @transform_3, window_bounds = array<i64: 2, 32, 256>}]} {
    %c0 = arith.constant 0 : index
    %c0_0 = arith.constant 0 : index
    %c0_1 = arith.constant 0 : index
    %0 = vector.load %arg1[%c0, %c0_0, %c0_1] : memref<2x32x256xf32, #tpu.memory_space<vmem>>, vector<2x32x256xf32>
    %cst = arith.constant dense<0.000000e+00> : vector<2x32xf32>
    %1 = vector.multi_reduction <add>, %0, %cst [2] : vector<2x32x256xf32> to vector<2x32xf32>
    %cst_2 = arith.constant 3.906250e-03 : f32
    %2 = vector.broadcast %cst_2 : f32 to vector<2x32xf32>
    %3 = arith.mulf %1, %2 : vector<2x32xf32>
    %c0_3 = arith.constant 0 : index
    %c0_4 = arith.constant 0 : index
    %4 = vector.load %arg2[%c0_3, %c0_4] : memref<2x32xf32, #tpu.memory_space<vmem>>, vector<2x32xf32>
    %cst_5 = arith.constant dense<0.000000e+00> : vector<2x2xf32>
    %5 = tpu.matmul %3, %4, %cst_5 {dimension_numbers = #tpu.dot_dimension_numbers<[1], [1], [0], [0], [0, 0, 1, 0], [], []>} : vector<2x32xf32>, vector<2x32xf32>, vector<2x2xf32> -> vector<2x2xf32>
    %cst_6 = arith.constant 0.000000e+00 : f32
    %6 = vector.broadcast %cst_6 : f32 to vector<2x2xf32>
    %7 = arith.maximumf %5, %6 : vector<2x2xf32>
    %c0_7 = arith.constant 0 : index
    %c0_8 = arith.constant 0 : index
    %8 = vector.load %arg3[%c0_7, %c0_8] : memref<32x2xf32, #tpu.memory_space<vmem>>, vector<32x2xf32>
    %cst_9 = arith.constant dense<0.000000e+00> : vector<2x32xf32>
    %9 = tpu.matmul %7, %8, %cst_9 {dimension_numbers = #tpu.dot_dimension_numbers<[1], [1], [0], [0], [0, 0, 1, 0], [], []>} : vector<2x2xf32>, vector<32x2xf32>, vector<2x32xf32> -> vector<2x32xf32>
    %10 = arith.negf %9 : vector<2x32xf32>
    %11 = math.exp %10 : vector<2x32xf32>
    %cst_10 = arith.constant 1.000000e+00 : f32
    %12 = vector.broadcast %cst_10 : f32 to vector<2x32xf32>
    %13 = arith.addf %12, %11 : vector<2x32xf32>
    %14 = arith.divf %12, %13 : vector<2x32xf32>
    %15 = vector.shape_cast %14 : vector<2x32xf32> to vector<2x32x1xf32>
    %16 = vector.broadcast %15 : vector<2x32x1xf32> to vector<2x32x256xf32>
    %17 = arith.mulf %0, %16 : vector<2x32x256xf32>
    %c0_11 = arith.constant 0 : index
    %c0_12 = arith.constant 0 : index
    %c0_13 = arith.constant 0 : index
    %18 = vector.load %arg4[%c0_11, %c0_12, %c0_13] : memref<2x32x256xf32, #tpu.memory_space<vmem>>, vector<2x32x256xf32>
    tpu.vector_store %arg4[%c0_11, %c0_12, %c0_13], %17 {strides = array<i32>} : memref<2x32x256xf32, #tpu.memory_space<vmem>>, vector<2x32x256xf32>,
    return
  }
  func.func @transform_0(%arg0: i32) -> (i32, i32, i32) {
    %c0_i32 = arith.constant 0 : i32
    %c0_i32_0 = arith.constant 0 : i32
    %c0_i32_1 = arith.constant 0 : i32
    return %arg0, %c0_i32, %c0_i32_0 : i32, i32, i32
  }
  func.func @transform_1(%arg0: i32) -> (i32, i32) {
    %c0_i32 = arith.constant 0 : i32
    %c0_i32_0 = arith.constant 0 : i32
    %c0_i32_1 = arith.constant 0 : i32
    return %c0_i32, %c0_i32_0 : i32, i32
  }
  func.func @transform_2(%arg0: i32) -> (i32, i32) {
    %c0_i32 = arith.constant 0 : i32
    %c0_i32_0 = arith.constant 0 : i32
    %c0_i32_1 = arith.constant 0 : i32
    return %c0_i32, %c0_i32_0 : i32, i32
  }
  func.func @transform_3(%arg0: i32) -> (i32, i32, i32) {
    %c0_i32 = arith.constant 0 : i32
    %c0_i32_0 = arith.constant 0 : i32
    %c0_i32_1 = arith.constant 0 : i32
    return %arg0, %c0_i32, %c0_i32_0 : i32, i32, i32
  }
}

</mosaic_0001>

<bundles_post_ra>
// kernel: tpu_custom_call.1
= control target key start
LH: loop header
LB: loop body
LE: loop exit
PB: predicated region body
PF: predicated region fallthrough
CT: control target
= control target key end

     0   :  { %8 = vsyncpa [#allocation3], 0  ;;  %s498_s0 = inlined_call_operand.hbm [shape: f32[2,32,256], index: 0, kind: input, shape index: {}]   ;;  %s499_s1 = inlined_call_operand.vmem [shape: f32[2,32], index: 1, kind: input, shape index: {}]   ;;  %s500_s2 = inlined_call_operand.vmem [shape: f32[32,2], index: 2, kind: input, shape index: {}]   ;;  %s501_s3 = inlined_call_operand.hbm [shape: f32[2,32,256], index: 3, kind: output, shape index: {}]  }
   0x1   :  { %9 = vsyncpa [#allocation4], 0  ;;  %s14_s14 = sshll.u32 %s498_s0, 4  ;;  %s376_s15 = smov [#allocation2]   ;;  %s15_s14 = int_to_ptr.hbm [resolvable:$true] %s14_s14 }
   0x2   :  { %s16_s16 = sshll.u32 %s376_s15, 4  ;;  %s377_s17 = smov 256   ;;  %s17_s16 = int_to_ptr.vmem [resolvable:$true] %s16_s16 }
   0x3   :  { %s378_s18 = smov 16  }
   0x4   :  { %22 = dma.hbm_to_vmem [thread:$0]  %s15_s14, 2048, %s17_s16, [#allocation3], %s377_s17, %s377_s17, %s378_s18  }
   0x5   :  { %372 = dma.done.wait [#allocation3], 2048  }
   0x6   :  { %373 = vsyncadd [#allocation3], 4294965248  ;;  %v406_v0 = vld [vmem:[#allocation2 + $0x40] sm:$0xff]  ;;  %v408_v1 = vld [vmem:[#allocation2 + $0x48] sm:$0xff]  ;;  %vm112_vm0 = vcmask 261120   ;;  %vm143_vm1 = vcmask 15360   ;;  %v88_v31 = vlaneseq }
   0x7   :  { %v410_v2 = vld [vmem:[#allocation2] sm:$0xff]  ;;  %v59_v3 = vadd.f32 %v408_v1, %v406_v0  ;;  %v414_v4 = vld [vmem:[#allocation2 + $0x8] sm:$0xff]  ;;  %v424_v9 = vld [vmem:[#allocation2 + $0x50] sm:$0xff]  ;;  %vm93_vm2 = vcmask 130112   ;;  %vm97_vm3 = vcmask 195712   ;;  %vm101_vm4 = vcmask 261312  }
   0x8   :  { %v416_v5 = vld [vmem:[#allocation2 + $0x20] sm:$0xff]  ;;  %v418_v6 = vld [vmem:[#allocation2 + $0x28] sm:$0xff]  ;;  %v47_v7 = vadd.f32 %v414_v4, %v410_v2  ;;  %v426_v10 = vld [vmem:[#allocation2 + $0x58] sm:$0xff]  ;;  %v89_v32 = vand.u32 127, %v88_v31  ;;  %vm110_vm5 = vcmask 1041409   ;;  %s286_s30 = sshll.u32 %s501_s3, 4  ;;  %s287_s30 = int_to_ptr.hbm [resolvable:$true] %s286_s30 }
   0x9   :  { %v53_v8 = vadd.f32 %v418_v6, %v416_v5  ;;  %60 = vadd.xlane.f32.xlu1 %v59_v3  ;;  %v428_v11 = vld [vmem:[#allocation2 + $0x10] sm:$0xff]  ;;  %v430_v12 = vld [vmem:[#allocation2 + $0x18] sm:$0xff]  ;;  %v432_v13 = vld [vmem:[#allocation2 + $0x60] sm:$0xff]  ;;  %v62_v15 = vadd.f32 %v426_v10, %v424_v9 }
   0xa   :  { %48 = vadd.xlane.f32.xlu0 %v47_v7  ;;  %v434_v14 = vld [vmem:[#allocation2 + $0x68] sm:$0xff]  ;;  %v50_v16 = vadd.f32 %v430_v12, %v428_v11  ;;  %v442_v18 = vld [vmem:[#allocation2 + $0x70] sm:$0xff]  ;;  %v444_v19 = vld [vmem:[#allocation2 + $0x78] sm:$0xff]  ;;  %v91_v34 = vadd.s32 4294967288, %v89_v32  ;;  %v95_v43 = vadd.s32 4294967280, %v89_v32  ;;  %v99_v47 = vadd.s32 4294967272, %v89_v32 }
   0xb   :  { %54 = vadd.xlane.f32.xlu2 %v53_v8  ;;  %v65_v17 = vadd.f32 %v434_v14, %v432_v13  ;;  %v446_v20 = vld [vmem:[#allocation2 + $0x30] sm:$0xff]  ;;  %v448_v21 = vld [vmem:[#allocation2 + $0x38] sm:$0xff]  ;;  %v68_v22 = vadd.f32 %v444_v19, %v442_v18  ;;  %v79_v24 = vld [vmem:[%s499_s1] sm:$0x3] }
   0xc   :  { %v56_v23 = vadd.f32 %v448_v21, %v446_v20  ;;  %299 = vmatpush.xpose.msk.msra.mxu0 %vm112_vm0, %v79_v24  ;;  %v142_v25 = vld [vmem:[%s500_s2 + $0x18] sm:$0xff]  ;;  %v141_v26 = vld [vmem:[%s500_s2 + $0x10] sm:$0xff]  ;;  %v140_v27 = vld [vmem:[%s500_s2 + $0x8] sm:$0xff] }
   0xd   :  { %301 = vmatpush.xpose.msk.msra.mxu1 %vm143_vm1, %v142_v25  ;;  %v139_v3 = vld [vmem:[%s500_s2] sm:$0xff]  ;;  %s379_s2 = smov [#allocation5]  }
   0xe   :  { %s284_s27 = sshll.u32 %s379_s2, 4  ;;  %s285_s27 = int_to_ptr.vmem [resolvable:$true] %s284_s27 }
  0x11   :  { %63 = vadd.xlane.f32.xlu1 %v62_v15  ;;  %302 = vmatpush.xpose.msk.msra.mxu1 %vm143_vm1, %v141_v26  ;;  %v200_v15 = vshrl.u32 %v88_v31, 7 }
  0x12   :  { %51 = vadd.xlane.f32.xlu0 %v50_v16 }
  0x13   :  { %66 = vadd.xlane.f32.xlu2 %v65_v17  ;;  %v213_v16 = vadd.s32 16, %v200_v15  ;;  %v207_v17 = vadd.s32 8, %v200_v15 }
  0x14   :  { %311 = vset.pattern.permute.xlu2 %v200_v15 }
  0x15   :  { %303 = vmatpush.xpose.msk.msra.mxu1 %vm143_vm1, %v140_v27  ;;  %313 = vset.pattern.permute.xlu1 %v213_v16 }
  0x16   :  { %312 = vset.pattern.permute.xlu0 %v207_v17 }
  0x19   :  { %69 = vadd.xlane.f32.xlu1 %v68_v22  ;;  %304 = vmatpush.xpose.msk.msra.mxu1 %vm143_vm1, %v139_v3 }
  0x1a   :  { %57 = vadd.xlane.f32.xlu0 %v56_v23 }
  0x7c   :  { %v61_v28 = vpop.xlane.xlu1 %60 }
  0x7d   :  { %v49_v29 = vpop.xlane.xlu0 %48  ;;  %v75_v39 = vmul.f32 0.00390625, %v61_v28 }
  0x7e   :  { %v55_v30 = vpop.xlane.xlu2 %54  ;;  %v71_v40 = vmul.f32 0.00390625, %v49_v29 }
  0x7f   :  { %v103_v45 = vperm.slane %v75_v39, %v89_v32  ;;  %v73_v46 = vmul.f32 0.00390625, %v55_v30 }
  0x80   :  { %v90_v48 = vperm.slane %v71_v40, %v89_v32 }
  0x81   :  { %v96_v56 = vperm.slane %v73_v46, %v95_v43 }
  0x84   :  { %v64_v33 = vpop.xlane.xlu1 %63 }
  0x85   :  { %v76_v35 = vmul.f32 0.00390625, %v64_v33  ;;  %v52_v36 = vpop.xlane.xlu0 %51 }
  0x86   :  { %v67_v37 = vpop.xlane.xlu2 %66  ;;  %v72_v38 = vmul.f32 0.00390625, %v52_v36 }
  0x87   :  { %v77_v41 = vmul.f32 0.00390625, %v67_v37  ;;  %v104_v42 = vperm.slane %v76_v35, %v91_v34  ;;  %v219_v37 = vadd.s32 24, %v200_v15 }
  0x88   :  { %v92_v44 = vperm.slane %v72_v38, %v91_v34 }
  0x89   :  { %v106_v49 = vperm.slane %v77_v41, %v95_v43  ;;  %v105_v51 = vsel %vm93_vm2, %v104_v42, %v103_v45 }
  0x8a   :  { %v94_v54 = vsel %vm93_vm2, %v92_v44, %v90_v48 }
  0x8b   :  { %v107_v59 = vsel %vm97_vm3, %v106_v49, %v105_v51  ;;  %v98_v60 = vsel %vm97_vm3, %v96_v56, %v94_v54 }
  0x8c   :  { %v70_v50 = vpop.xlane.xlu1 %69 }
  0x8d   :  { %v78_v52 = vmul.f32 0.00390625, %v70_v50  ;;  %v58_v53 = vpop.xlane.xlu0 %57 }
  0x8e   :  { %v74_v55 = vmul.f32 0.00390625, %v58_v53 }
  0x8f   :  { %v108_v57 = vperm.slane %v78_v52, %v99_v47 }
  0x90   :  { %v100_v58 = vperm.slane %v74_v55, %v99_v47 }
  0x91   :  { %v109_v61 = vsel %vm101_vm4, %v108_v57, %v107_v59 }
  0x92   :  { %v102_v62 = vsel %vm101_vm4, %v100_v58, %v98_v60 }
  0x93   :  { %v111_v63 = vsel %vm110_vm5, %v109_v61, %v102_v62 }
  0x94   :  { %300 = vmatmul.msk.f32.vlgmr.msra.gmra.mxu0 %vm112_vm0, %v111_v63 }
 0x111   :  { %v135_v7 = vpop.f32.mrf.mxu0 }
 0x112   :  { %v138_v8 = vmax.f32 %v135_v7, 0.0 }
 0x114   :  { %305 = vmatmul.msk.f32.vlgmr.msra.gmra.mxu1 %vm143_vm1, %v138_v8 }
 0x191   :  { %v176_v22 = vpop.f32.mrf.mxu1 }
 0x192   :  { %v306_v23 = vmul.f32 -1.442695, %v176_v22 }
 0x194   :  { %320 = vpow2.f32 %v306_v23 }
 0x19a   :  { %v321_v24 = vpop.eup %320 }
 0x19b   :  { %v182_v25 = vadd.f32 1.0, %v321_v24 }
 0x19d   :  { %322 = vrcp.f32 %v182_v25  ;;  %v194_v29 = vand.u32 2147483648, %v182_v25  ;;  %v192_v32 = vand.u32 2147483647, %v182_v25  ;;  %vm188_vm7 = vweird.f32 %v182_v25 }
 0x19f   :  { %v195_v31 = vor.u32 1.1754944e-38, %v194_v29  ;;  %vm193_vm9 = vcmp.eq.f32.partialorder %v192_v32, 8.507059e+37 }
 0x1a3   :  { %v323_v26 = vpop.eup %322 }
 0x1a4   :  { %v184_v27 = vmul.f32 %v323_v26, %v182_v25  ;;  %vm189_vm6 = vweird.f32 %v323_v26 }
 0x1a5   :  { %vm190_vm8 = vmor %vm188_vm7, %vm189_vm6 }
 0x1a6   :  { %v185_v28 = vsub.f32 1.0, %v184_v27 }
 0x1a8   :  { %v186_v30 = vmul.f32 %v323_v26, %v185_v28 }
 0x1aa   :  { %v187_v33 = vadd.f32 %v323_v26, %v186_v30 }
 0x1ac   :  { %v191_v34 = vsel %vm190_vm8, %v323_v26, %v187_v33 }
 0x1ad   :  { %v196_v35 = vsel %vm193_vm9, %v195_v31, %v191_v34 }
 0x1ae   :  { %v198_v36 = vperm.slane %v196_v35, 0  ;;  %v223_v38 = vperm.slane %v196_v35, 1 }
 0x1b0   :  { %215 = vperm.xlu1 %313, %v198_v36   ;;  %209 = vperm.xlu0 %312, %v198_v36  }
 0x1b1   :  { %203 = vperm.xlu2 %311, %v198_v36  }
 0x1b8   :  { %316 = vset.pattern.permute.xlu1 %v207_v17  ;;  %319 = vset.pattern.permute.xlu0 %v219_v37 }
 0x1b9   :  { %314 = vset.pattern.permute.xlu2 %v219_v37 }
 0x1c0   :  { %234 = vperm.xlu1 %316, %v223_v38  }
 0x1c1   :  { %221 = vperm.xlu2 %314, %v198_v36  }
 0x1c8   :  { %318 = vset.pattern.permute.xlu1 %v219_v37 }
 0x1c9   :  { %315 = vset.pattern.permute.xlu2 %v200_v15 }
 0x1d0   :  { %246 = vperm.xlu1 %318, %v223_v38  }
 0x1d1   :  { %228 = vperm.xlu2 %315, %v223_v38  }
 0x1d9   :  { %317 = vset.pattern.permute.xlu2 %v213_v16 }
 0x1e1   :  { %240 = vperm.xlu2 %317, %v223_v38  }
 0x20b   :  { %v204_v39 = vpop.permute.xlu2 %203 }
 0x20c   :  { %v248_v40 = vmul.f32 %v204_v39, %v410_v2  ;;  %v249_v41 = vmul.f32 %v204_v39, %v414_v4 }
 0x20e   :  { %264 = vst [vmem:[#allocation5] sm:$0xff] %v248_v40 }
 0x20f   :  { %265 = vst [vmem:[#allocation5 + $0x8] sm:$0xff] %v249_v41 }
 0x21b   :  { %v222_v42 = vpop.permute.xlu2 %221 }
 0x21c   :  { %v254_v43 = vmul.f32 %v222_v42, %v446_v20  ;;  %v255_v44 = vmul.f32 %v222_v42, %v448_v21 }
 0x21e   :  { %270 = vst [vmem:[#allocation5 + $0x30] sm:$0xff] %v254_v43 }
 0x21f   :  { %271 = vst [vmem:[#allocation5 + $0x38] sm:$0xff] %v255_v44 }
 0x222   :  { %v216_v45 = vpop.permute.xlu1 %215  ;;  %v210_v46 = vpop.permute.xlu0 %209 }
 0x223   :  { %v252_v47 = vmul.f32 %v216_v45, %v416_v5  ;;  %v253_v48 = vmul.f32 %v216_v45, %v418_v6  ;;  %v250_v49 = vmul.f32 %v210_v46, %v428_v11  ;;  %v251_v2 = vmul.f32 %v210_v46, %v430_v12 }
 0x225   :  { %268 = vst [vmem:[#allocation5 + $0x20] sm:$0xff] %v252_v47 }
 0x226   :  { %269 = vst [vmem:[#allocation5 + $0x28] sm:$0xff] %v253_v48 }
 0x227   :  { %266 = vst [vmem:[#allocation5 + $0x10] sm:$0xff] %v250_v49 }
 0x228   :  { %267 = vst [vmem:[#allocation5 + $0x18] sm:$0xff] %v251_v2 }
 0x22b   :  { %v229_v4 = vpop.permute.xlu2 %228 }
 0x22c   :  { %v256_v20 = vmul.f32 %v229_v4, %v406_v0  ;;  %v257_v21 = vmul.f32 %v229_v4, %v408_v1 }
 0x22e   :  { %272 = vst [vmem:[#allocation5 + $0x40] sm:$0xff] %v256_v20 }
 0x22f   :  { %273 = vst [vmem:[#allocation5 + $0x48] sm:$0xff] %v257_v21 }
 0x232   :  { %v235_v50 = vpop.permute.xlu1 %234 }
 0x233   :  { %v258_v5 = vmul.f32 %v235_v50, %v424_v9  ;;  %v259_v6 = vmul.f32 %v235_v50, %v426_v10 }
 0x235   :  { %274 = vst [vmem:[#allocation5 + $0x50] sm:$0xff] %v258_v5 }
 0x236   :  { %275 = vst [vmem:[#allocation5 + $0x58] sm:$0xff] %v259_v6 }
 0x23b   :  { %v241_v11 = vpop.permute.xlu2 %240 }
 0x23c   :  { %v260_v12 = vmul.f32 %v241_v11, %v432_v13  ;;  %v261_v51 = vmul.f32 %v241_v11, %v434_v14 }
 0x23e   :  { %276 = vst [vmem:[#allocation5 + $0x60] sm:$0xff] %v260_v12 }
 0x23f   :  { %277 = vst [vmem:[#allocation5 + $0x68] sm:$0xff] %v261_v51 }
 0x242   :  { %v247_v0 = vpop.permute.xlu1 %246 }
 0x243   :  { %v262_v1 = vmul.f32 %v247_v0, %v442_v18  ;;  %v263_v9 = vmul.f32 %v247_v0, %v444_v19 }
 0x245   :  { %278 = vst [vmem:[#allocation5 + $0x70] sm:$0xff] %v262_v1 }
 0x246   :  { %279 = vst [vmem:[#allocation5 + $0x78] sm:$0xff] %v263_v9 }
 0x247   :  { %292 = dma.vmem_to_hbm [thread:$0]  %s285_s27, 2048, %s287_s30, [#allocation4], %s377_s17, %s377_s17, %s378_s18  }
 0x248   :  { %374 = dma.done.wait [#allocation4], 2048  }
 0x249   :  { %375 = vsyncadd [#allocation4], 4294965248 }
 0x24a   :  { %297 = vsyncpa [#allocation3], 1 }
 0x24b   :  { %298 = vsyncpa [#allocation4], 1 }

</bundles_post_ra>
